<compile_context>
chip_gen: v7x
topology: tpu7x:2x2x1
jax: 0.10.0
libtpu: 0.0.40
codegen_flags: <defaults>
</compile_context>

<pallas_src>
import math

import jax
import jax.numpy as jnp
from jax.experimental import pallas as pl
from jax.experimental.pallas import tpu as pltpu


def _layer_scale_kernel(x_ref, g_ref, o_ref):
    # x_ref: (tile_rows, tile_cols) in VMEM; g_ref: (1, tile_cols) gamma row,
    # broadcast over rows. Pure VPU elementwise multiply; DMA is the bottleneck.
    o_ref[...] = x_ref[...] * g_ref[...]


def _vmem_capacity_bytes() -> int:
    """Trace-time VMEM query; conservative (v7x-sized) fallback if unavailable."""
    try:
        info = pltpu.get_tpu_info()
        cap = getattr(info, "vmem_capacity_bytes", None)
        if cap:
            return int(cap)
    except Exception:
        pass
    return 64 << 20  # assume the smallest (v7x) VMEM if we can't tell


def layer_scale(x: jax.Array, gamma: jax.Array) -> jax.Array:
    """Apply per-feature scaling: out[..., d] = x[..., d] * gamma[d]."""
    orig_shape = x.shape
    dim = orig_shape[-1]
    assert gamma.shape == (dim,), f"gamma must be ({dim},), got {gamma.shape}"

    out_dtype = x.dtype
    # Common same-dtype path; if x is bf16 and gamma f32 this rounds gamma to
    # bf16 first (tiny precision delta vs. torch's f32 promotion).
    g = gamma.astype(out_dtype)
    dtype_bytes = jnp.dtype(out_dtype).itemsize

    # --- Generation-aware VMEM budgets --------------------------------------
    vmem_cap = _vmem_capacity_bytes()
    if vmem_cap <= (64 << 20):            # v7x: 64 MiB VMEM per TensorCore
        vmem_block_bytes = 4 << 20        # 2x(in)+2x(out) double-buffered = 16 MiB
        vmem_limit = 32 << 20             # keep the default scoped limit
    else:                                 # v5e / v6e: 128 MiB VMEM
        vmem_block_bytes = 8 << 20
        vmem_limit = 48 << 20

    # --- Flatten leading axes into rows --------------------------------------
    x2d = x.reshape(-1, dim)
    rows = x2d.shape[0]

    # --- Generalized lane folding --------------------------------------------
    # fold consecutive rows into the lane axis so the effective last dim is a
    # multiple of 128 -> unmasked, lane-dense loads/stores. gamma is tiled to
    # match; semantics identical (each dim-wide lane group scales by gamma).
    fold = 128 // math.gcd(dim, 128)
    rows_pad = 0
    if fold > 1:
        rows_pad = (-rows) % fold
        if rows_pad:
            # Pad rows to a fold multiple (one extra copy, only on ragged row
            # counts) so the lane-dense path is always taken for small dims.
            x2d = jnp.pad(x2d, ((0, rows_pad), (0, 0)))
        g = jnp.tile(g, fold)
    rows_eff = (rows + rows_pad) // fold
    dim_eff = dim * fold                  # always a multiple of 128 (or == dim)
    x2d = x2d.reshape(rows_eff, dim_eff)
    g2d = g.reshape(1, dim_eff)

    # --- dtype-aware sublane multiple ----------------------------------------
    sub = max(8, 32 // dtype_bytes)       # 8 (f32), 16 (bf16), 32 (int8/fp8)

    # --- Feature-axis tiling (only for very wide dims) ------------------------
    col_budget = max(128, ((vmem_block_bytes // (sub * dtype_bytes)) // 128) * 128)
    tile_cols = dim_eff if dim_eff <= col_budget else col_budget

    # --- Row tiling: fill the block budget, but keep >=4 grid steps -----------
    tile_rows = vmem_block_bytes // max(1, tile_cols * dtype_bytes)
    tile_rows = max(sub, (tile_rows // sub) * sub)
    if rows_eff > sub:
        cap = -(-rows_eff // 4)                          # cdiv(rows_eff, 4)
        cap = max(sub, ((cap + sub - 1) // sub) * sub)   # round up to sublane
        tile_rows = min(tile_rows, cap)
    if tile_rows >= rows_eff:
        tile_rows = rows_eff                             # full-extent block

    grid = (pl.cdiv(rows_eff, tile_rows), pl.cdiv(dim_eff, tile_cols))

    n_elems = rows_eff * dim_eff
    cost = pl.CostEstimate(
        flops=n_elems,
        transcendentals=0,
        bytes_accessed=2 * n_elems * dtype_bytes + dim_eff * dtype_bytes,
    )

    out = pl.pallas_call(
        _layer_scale_kernel,
        out_shape=jax.ShapeDtypeStruct((rows_eff, dim_eff), out_dtype),
        grid_spec=pltpu.PrefetchScalarGridSpec(
            num_scalar_prefetch=0,
            grid=grid,
            in_specs=[
                pl.BlockSpec((tile_rows, tile_cols), lambda i, j: (i, j)),
                pl.BlockSpec((1, tile_cols), lambda i, j: (0, j)),  # gamma row
            ],
            out_specs=pl.BlockSpec((tile_rows, tile_cols), lambda i, j: (i, j)),
        ),
        compiler_params=pltpu.CompilerParams(
            dimension_semantics=("parallel", "parallel"),  # v7x: split across TCs
            vmem_limit_bytes=vmem_limit,
        ),
        cost_estimate=cost,
    )(x2d, g2d)

    out2d = out.reshape(rows + rows_pad, dim)
    if rows_pad:
        out2d = out2d[:rows]
    return out2d.reshape(orig_shape)


if __name__ == "__main__":
    key = jax.random.PRNGKey(0)
    k1, k2 = jax.random.split(key)

    # Shapes consistent with the module: tokens of hidden size `dim`.
    batch, seq, dim = 2, 8, 32
    init_values = 1e-5

    # Deterministic parameter init, as in __init__: gamma = init_values * ones(dim)
    gamma = init_values * jnp.ones((dim,), dtype=jnp.float32)

    x = jax.random.normal(k1, (batch, seq, dim), dtype=jnp.float32)
    out = jax.block_until_ready(layer_scale(x, gamma))
    ref = x * gamma
    assert out.shape == x.shape and out.dtype == x.dtype
    assert jnp.allclose(out, ref, atol=1e-6, rtol=1e-6), "mismatch vs reference"

    # Exercise the ragged-row (padded) folded path: rows = 15 not divisible by fold.
    x_odd = jax.random.normal(k2, (3, 5, dim), dtype=jnp.float32)
    out_odd = jax.block_until_ready(layer_scale(x_odd, gamma))
    assert jnp.allclose(out_odd, x_odd * gamma, atol=1e-6, rtol=1e-6), "mismatch (padded path)"

    print("KERNEL_OK")
</pallas_src>

<mosaic_0001>
module attributes {stable_mosaic.version = 11 : i64} {
  func.func @_layer_scale_kernel(%arg0: i32, %arg1: i32, %arg2: memref<4x128xf32, #tpu.memory_space<vmem>>, %arg3: memref<1x128xf32, #tpu.memory_space<vmem>>, %arg4: memref<4x128xf32, #tpu.memory_space<vmem>>) attributes {dimension_semantics = [#tpu.dimension_semantics<parallel>, #tpu.dimension_semantics<parallel>], iteration_bounds = array<i64: 1, 1>, scalar_prefetch = 0 : i64, scratch_operands = 0 : i64, tpu.core_type = #tpu.core_type<tc>, window_params = [{transform_indices = @transform_0, window_bounds = array<i64: 4, 128>}, {transform_indices = @transform_1, window_bounds = array<i64: 1, 128>}, {transform_indices = @transform_2, window_bounds = array<i64: 4, 128>}]} {
    %c0 = arith.constant 0 : index
    %c0_0 = arith.constant 0 : index
    %0 = vector.load %arg2[%c0, %c0_0] : memref<4x128xf32, #tpu.memory_space<vmem>>, vector<4x128xf32>
    %c0_1 = arith.constant 0 : index
    %c0_2 = arith.constant 0 : index
    %1 = vector.load %arg3[%c0_1, %c0_2] : memref<1x128xf32, #tpu.memory_space<vmem>>, vector<1x128xf32>
    %2 = vector.broadcast %1 : vector<1x128xf32> to vector<4x128xf32>
    %3 = arith.mulf %0, %2 : vector<4x128xf32>
    %c0_3 = arith.constant 0 : index
    %c0_4 = arith.constant 0 : index
    %4 = vector.load %arg4[%c0_3, %c0_4] : memref<4x128xf32, #tpu.memory_space<vmem>>, vector<4x128xf32>
    tpu.vector_store %arg4[%c0_3, %c0_4], %3 {strides = array<i32>} : memref<4x128xf32, #tpu.memory_space<vmem>>, vector<4x128xf32>,
    return
  }
  func.func @transform_0(%arg0: i32, %arg1: i32) -> (i32, i32) {
    %c0_i32 = arith.constant 0 : i32
    return %arg0, %arg1 : i32, i32
  }
  func.func @transform_1(%arg0: i32, %arg1: i32) -> (i32, i32) {
    %c0_i32 = arith.constant 0 : i32
    %c0_i32_0 = arith.constant 0 : i32
    return %c0_i32, %arg1 : i32, i32
  }
  func.func @transform_2(%arg0: i32, %arg1: i32) -> (i32, i32) {
    %c0_i32 = arith.constant 0 : i32
    return %arg0, %arg1 : i32, i32
  }
}

</mosaic_0001>

<bundles_post_ra>
// kernel: tpu_custom_call.1
= control target key start
LH: loop header
LB: loop body
LE: loop exit
PB: predicated region body
PF: predicated region fallthrough
CT: control target
= control target key end

     0   :  { %7 = vsyncpa [#allocation3], 0  ;;  %s144_s0 = inlined_call_operand.hbm [shape: f32[4,128], index: 0, kind: input, shape index: {}]   ;;  %s145_s1 = inlined_call_operand.vmem [shape: f32[1,128], index: 1, kind: input, shape index: {}]   ;;  %s146_s2 = inlined_call_operand.hbm [shape: f32[4,128], index: 2, kind: output, shape index: {}]  }
   0x1   :  { %8 = vsyncpa [#allocation4], 0  ;;  %s100_s9 = smov [#allocation2]   ;;  %s52_s13 = scalar_lea.hbm %s144_s0, 64 }
   0x2   :  { %s15_s10 = sshll.u32 %s100_s9, 4  ;;  %p53_p0 = scmp.ne.s32.totalorder %s144_s0, %s52_s13  ;;  %s16_s10 = int_to_ptr.vmem [resolvable:$true] %s15_s10 }
   0x3   :  { %p56_p1 = scmp.lt.u32.totalorder %s52_s13, %s144_s0 }
   0x5   :  { %p58_p2 = pnand %p56_p1, %p53_p0 }
   0x7   :  { %61 = shalt.err (!%p58_p2)
}
   0x8   :  { %s62_s18 = scalar_lea.vmem %s16_s10, 64  ;;  %p67_p4 = scmp.lt.s32.totalorder %s16_s10, %s16_s10 }
   0x9   :  { %p63_p3 = scmp.ne.s32.totalorder %s16_s10, %s62_s18  ;;  %p68_p5 = scmp.lt.s32.totalorder %s62_s18, %s62_s18 }
   0xb   :  { %p69_p6 = por %p68_p5, %p67_p4 }
   0xd   :  { %p70_p7 = pnand %p69_p6, %p63_p3 }
   0xf   :  { %73 = shalt.err (!%p70_p7)
}
  0x10   :  { %18 = dma.hbm_to_vmem [thread:$0]  %s144_s0, 64, %s16_s10, [#allocation3]  }
  0x11   :  { %96 = dma.done.wait [#allocation3], 64  }
  0x12   :  { %97 = vsyncadd [#allocation3], 4294967232  ;;  %s101_s21 = smov [#allocation5]   ;;  %v24_v0 = vld [vmem:[#allocation2] sm:$0xf] }
  0x13   :  { %s40_s22 = sshll.u32 %s101_s21, 4  ;;  %v49_v1 = vld [vmem:[%s145_s1] ss:$0 sm:$0xff]  ;;  %s41_s22 = int_to_ptr.vmem [resolvable:$true] %s40_s22 }
  0x14   :  { %v32_v2 = vmul.f32 %v49_v1, %v24_v0  ;;  %s74_s25 = scalar_lea.vmem %s41_s22, 64  ;;  %p79_p9 = scmp.lt.s32.totalorder %s41_s22, %s41_s22 }
  0x15   :  { %p75_p8 = scmp.ne.s32.totalorder %s41_s22, %s74_s25  ;;  %p80_p10 = scmp.lt.s32.totalorder %s74_s25, %s74_s25 }
  0x16   :  { %33 = vst [vmem:[#allocation5] sm:$0xf] %v32_v2 }
  0x17   :  { %p81_p11 = por %p80_p10, %p79_p9 }
  0x19   :  { %p82_p12 = pnand %p81_p11, %p75_p8 }
  0x1b   :  { %85 = shalt.err (!%p82_p12)
}
  0x1c   :  { %s86_s27 = scalar_lea.hbm %s146_s2, 64 }
  0x1d   :  { %p87_p13 = scmp.ne.s32.totalorder %s146_s2, %s86_s27  ;;  %p90_p0 = scmp.lt.u32.totalorder %s86_s27, %s146_s2 }
  0x1f   :  { %p92_p1 = pnand %p90_p0, %p87_p13 }
  0x21   :  { %95 = shalt.err (!%p92_p1)
}
  0x22   :  { %43 = dma.vmem_to_hbm [thread:$0]  %s41_s22, 64, %s146_s2, [#allocation4]  }
  0x23   :  { %98 = dma.done.wait [#allocation4], 64  }
  0x24   :  { %99 = vsyncadd [#allocation4], 4294967232 }
  0x25   :  { %47 = vsyncpa [#allocation3], 1 }
  0x26   :  { %48 = vsyncpa [#allocation4], 1 }

</bundles_post_ra>
